<compile_context>
chip_gen: v7x
topology: tpu7x:2x2x1
jax: 0.10.0
libtpu: 0.0.40
codegen_flags: <defaults>
</compile_context>

<pallas_src>
import jax
import jax.numpy as jnp
from jax.experimental import pallas as pl
from jax.experimental.pallas import tpu as pltpu


def _l1_norm_dim0_kernel(x_ref, o_ref):
    # x_ref: (1, tm, N) slice of the input for batch index b = program_id(1)
    # o_ref: (tm, N) accumulator, resident across the B (reduction) axis.
    @pl.when(pl.program_id(1) == 0)
    def _():
        o_ref[...] = jnp.zeros_like(o_ref)

    o_ref[...] += jnp.abs(x_ref[0])


def reduce_l1_norm_dim0(a: jax.Array, *, row_tile: int | None = None,
                        target_tile_bytes: int = 2 * 1024 * 1024) -> jax.Array:
    """L1 norm over dim 0 of a rank-3 float32 array: out[m, n] = sum_b |a[b, m, n]|.

    Accumulates in float32.
    # TODO(synk): torch's dtype=torch.float64 accumulation/output has no clean
    # Pallas TPU equivalent (no f64 on the TPU vector units); we accumulate in
    # f32 and return f32, leaving any final f64 cast to the caller.
    """
    assert a.ndim == 3, "ReduceL1NormWithDTypeModule expects a rank-3 tensor"
    a = a.astype(jnp.float32)
    B, M, N = a.shape

    # ---- choose row tile (tm): multiple of 8, or the full M dimension -------
    if row_tile is not None:
        tm = min(row_tile, M)
        if tm < M and tm % 8 != 0:
            tm = max(8, (tm // 8) * 8)
    elif M <= 8:
        tm = M
    else:
        bytes_per_row = N * 4
        rows = max(8, ((target_tile_bytes // max(bytes_per_row, 1)) // 8) * 8)
        tm = M if rows >= M else rows

    # ---- pad M to a multiple of tm with zeros (identity for an L1 sum) ------
    num_row_tiles = pl.cdiv(M, tm)
    m_padded = num_row_tiles * tm
    if m_padded != M:
        a = jnp.pad(a, ((0, 0), (0, m_padded - M), (0, 0)))

    grid = (num_row_tiles, B)  # reduction axis (B) last, per convention

    out = pl.pallas_call(
        _l1_norm_dim0_kernel,
        out_shape=jax.ShapeDtypeStruct((m_padded, N), jnp.float32),
        grid=grid,
        in_specs=[pl.BlockSpec((1, tm, N), lambda i, b: (b, i, 0))],
        # Output block index is constant across b -> VMEM-resident accumulator.
        out_specs=pl.BlockSpec((tm, N), lambda i, b: (i, 0)),
        compiler_params=pltpu.CompilerParams(
            dimension_semantics=("parallel", "arbitrary"),
            vmem_limit_bytes=32 * 1024 * 1024,
        ),
    )(a)

    if m_padded != M:
        out = out[:M]
    return out


if __name__ == "__main__":
    key = jax.random.PRNGKey(0)

    # Shape consistent with the module's ([-1, -1, -1], float32) signature.
    k1, k2 = jax.random.split(key)
    x1 = jax.random.normal(k1, (2, 4, 16), dtype=jnp.float32)
    res1 = jax.block_until_ready(reduce_l1_norm_dim0(x1))
    ref1 = jnp.sum(jnp.abs(x1), axis=0)
    assert res1.shape == ref1.shape == (4, 16)
    assert res1.dtype == jnp.float32
    assert jnp.allclose(res1, ref1, rtol=1e-6, atol=1e-6), (res1, ref1)

    # Second case exercises the row-tiled + zero-padded path (M=20 with tm=8).
    x2 = jax.random.normal(k2, (3, 20, 128), dtype=jnp.float32)
    res2 = jax.block_until_ready(reduce_l1_norm_dim0(x2, row_tile=8))
    ref2 = jnp.sum(jnp.abs(x2), axis=0)
    assert res2.shape == ref2.shape == (20, 128)
    assert jnp.allclose(res2, ref2, rtol=1e-6, atol=1e-6), (res2, ref2)

    print("KERNEL_OK")
</pallas_src>

<mosaic_0001>
module attributes {stable_mosaic.version = 11 : i64} {
  func.func @_l1_norm_dim0_kernel(%arg0: i32, %arg1: i32, %arg2: memref<1x4x16xf32, #tpu.memory_space<vmem>>, %arg3: memref<4x16xf32, #tpu.memory_space<vmem>>) attributes {dimension_semantics = [#tpu.dimension_semantics<parallel>, #tpu.dimension_semantics<arbitrary>], iteration_bounds = array<i64: 1, 2>, scalar_prefetch = 0 : i64, scratch_operands = 0 : i64, tpu.core_type = #tpu.core_type<tc>, window_params = [{transform_indices = @transform_0, window_bounds = array<i64: 1, 4, 16>}, {transform_indices = @transform_1, window_bounds = array<i64: 4, 16>}]} {
    %c0_i32 = arith.constant 0 : i32
    %0 = arith.cmpi eq, %arg1, %c0_i32 : i32
    %1 = arith.extui %0 : i1 to i32
    %c0_i32_0 = arith.constant 0 : i32
    %2 = arith.cmpi ne, %1, %c0_i32_0 : i32
    scf.if %2 {
      %cst = arith.constant 0.000000e+00 : f32
      %9 = vector.broadcast %cst : f32 to vector<4x16xf32>
      %c0_7 = arith.constant 0 : index
      %c0_8 = arith.constant 0 : index
      %10 = vector.load %arg3[%c0_7, %c0_8] : memref<4x16xf32, #tpu.memory_space<vmem>>, vector<4x16xf32>
      tpu.vector_store %arg3[%c0_7, %c0_8], %9 {strides = array<i32>} : memref<4x16xf32, #tpu.memory_space<vmem>>, vector<4x16xf32>,
    } else {
    }
    %c0 = arith.constant 0 : index
    %c0_1 = arith.constant 0 : index
    %3 = vector.load %arg3[%c0, %c0_1] : memref<4x16xf32, #tpu.memory_space<vmem>>, vector<4x16xf32>
    %c0_2 = arith.constant 0 : index
    %c0_3 = arith.constant 0 : index
    %c0_4 = arith.constant 0 : index
    %4 = vector.load %arg2[%c0_2, %c0_3, %c0_4] : memref<1x4x16xf32, #tpu.memory_space<vmem>>, vector<1x4x16xf32>
    %5 = vector.shape_cast %4 : vector<1x4x16xf32> to vector<4x16xf32>
    %6 = math.absf %5 : vector<4x16xf32>
    %7 = arith.addf %3, %6 : vector<4x16xf32>
    %c0_5 = arith.constant 0 : index
    %c0_6 = arith.constant 0 : index
    %8 = vector.load %arg3[%c0_5, %c0_6] : memref<4x16xf32, #tpu.memory_space<vmem>>, vector<4x16xf32>
    tpu.vector_store %arg3[%c0_5, %c0_6], %7 {strides = array<i32>} : memref<4x16xf32, #tpu.memory_space<vmem>>, vector<4x16xf32>,
    return
  }
  func.func @transform_0(%arg0: i32, %arg1: i32) -> (i32, i32, i32) {
    %c0_i32 = arith.constant 0 : i32
    %c0_i32_0 = arith.constant 0 : i32
    return %arg1, %arg0, %c0_i32 : i32, i32, i32
  }
  func.func @transform_1(%arg0: i32, %arg1: i32) -> (i32, i32) {
    %c0_i32 = arith.constant 0 : i32
    %c0_i32_0 = arith.constant 0 : i32
    return %arg0, %c0_i32 : i32, i32
  }
}

</mosaic_0001>

<bundles_post_ra>
// kernel: tpu_custom_call.1
= control target key start
LH: loop header
LB: loop body
LE: loop exit
PB: predicated region body
PF: predicated region fallthrough
CT: control target
= control target key end

     0   :  { %6 = vsyncpa [#allocation3], 0  ;;  %s574_s0 = inlined_call_operand.hbm [shape: f32[2,4,16], index: 0, kind: input, shape index: {}]   ;;  %s575_s1 = inlined_call_operand.hbm [shape: f32[4,16], index: 1, kind: output, shape index: {}]  }
   0x1   :  { %8 = vsyncpa [#allocation3 + $0x1], 0 }
   0x2   :  { %9 = vsyncpa [#allocation4], 0  ;;  %s423_s6 = smov 0   ;;  %s425_s7 = smov 0  }
   0x3   :  { %s427_s8 = smov 0   ;;  %s429_s9 = smov 0  }
   0x4   :  { %s431_s10 = smov 0   ;;  %s433_s11 = smov 0  }
   0x5 LB: > { %s223_s12 = sadd.s32 4294967295, %s408_s11   ;;  %s24_s13 = sadd.s32 1, %s404_s10  ;;  %s408_s11 = sphi %s433_s11, %s15_s11   ;;  %s404_s10 = sphi %s431_s10, %s586_s10   ;;  %s400_s9 = sphi %s429_s9, %s585_s9   ;;  %s396_s8 = sphi %s427_s8, %s584_s8   ;;  %s392_s7 = sphi %s425_s7, %s583_s7   ;;  %s388_s6 = sphi %s423_s6, %s582_s6  }
   0x6   : > { %p25_p0 = scmp.ge.s32.totalorder %s24_s13, 2  ;;  %s36_s14 = sadd.s32 1, %s396_s8 }
   0x7   : > { %p43_p1 = scmp.ne.s32.totalorder %s396_s8, %s392_s7  ;;  %p44_p2 = scmp.eq.s32.totalorder %s408_s11, 0 }
   0x8   : > { %s588_s13 = smov (%p25_p0, %s24_s13), 0  ;;  %p49_p4 = scmp.ne.s32.totalorder %s392_s7, %s388_s6 }
   0x9   : > { %p459_p3 = por %p44_p2, %p43_p1  ;;  %s31_s16 = ssub.s32 %s404_s10, %s588_s13 }
   0xa   : > { %p50_p5 = scmp.eq.s32.totalorder %s223_s12, 0  ;;  %p34_p6 = scmp.eq.s32.totalorder %s31_s16, 0 }
   0xb   : > { %p245_p8 = scmp.lt.s32.totalorder %s408_s11, 2  ;;  %s99_s19 = sand.u32 1, %s396_s8  }
   0xc   : > { %p468_p7 = por %p50_p5, %p49_p4  ;;  %s227_s20 = sshll.u32 %s404_s10, 6 }
   0xd   : > { %s474_s18 = scalar_select %p34_p6, %s396_s8, %s36_s14  }
   0xe   : > { %s226_s21 = sshll.u32 %s99_s19, 2  ;;  %s481_s24 = scalar_lea.hbm %s574_s0, %s227_s20 }
   0xf   : > { %s103_s25 = scalar_lea.vmem [#allocation2], %s226_s21  ;;  %p485_p9 = pnand %p245_p8, %p459_p3 }
  0x10   : > { %s111_s26 = sshll.u32 %s103_s25, 4  ;;  %s100_s28 = scalar_lea.sflag [#allocation3], %s99_s19  ;;  %s489_s26 = int_to_ptr.vmem [resolvable:$true] %s111_s26 }
  0x11   : > { %s298_s29 = scalar_lea.hbm %s481_s24, 64  ;;  %p300_p13 = pneg %p485_p9 }
  0x12   : > { %p299_p12 = scmp.ne.s32.totalorder %s481_s24, %s298_s29  ;;  %s303_s3 = scalar_lea.hbm %s574_s0, 128 }
  0x13   : > { %p304_p2 = scmp.lt.u32.totalorder %s481_s24, %s574_s0  ;;  %p305_p3 = scmp.lt.u32.totalorder %s303_s3, %s298_s29 }
  0x14   : > { %p301_p0 = pnand %p300_p13, %p299_p12  ;;  %p307_p5 = scmp.lt.u32.totalorder %s298_s29, %s481_s24 }
  0x15   : > { %p306_p4 = por %p305_p3, %p304_p2 }
  0x16   : > { %p302_p1 = pneg %p301_p0 }
  0x17   : > { %p308_p6 = por %p307_p5, %p306_p4 }
  0x19   : > { %p309_p8 = pnand %p308_p6, %p302_p1 }
  0x1b   : > { %312 = shalt.err (!%p309_p8)
}
  0x1c   : > { %s313_s6 = scalar_lea.vmem %s489_s26, 64  ;;  %s410_s14 = smov [#allocation2]  }
  0x1d   : > { %p314_p12 = scmp.ne.s32.totalorder %s489_s26, %s313_s6  ;;  %s318_s15 = sshll.u32 %s410_s14, 4  ;;  %s319_s15 = int_to_ptr.vmem [resolvable:$false] %s318_s15 }
  0x1e   : > { %s320_s16 = scalar_lea.vmem %s319_s15, 128  ;;  %p321_p11 = scmp.lt.s32.totalorder %s489_s26, %s319_s15 }
  0x1f   : > { %p316_p0 = pnand %p314_p12, %p300_p13  ;;  %p322_p2 = scmp.lt.s32.totalorder %s320_s16, %s313_s6 }
  0x21   : > { %p317_p10 = pneg %p316_p0  ;;  %p323_p3 = por %p322_p2, %p321_p11 }
  0x23   : > { %p324_p4 = pnand %p323_p3, %p317_p10 }
  0x25   : > { %327 = shalt.err (!%p324_p4)
}
  0x26   : > { %244 = dma.hbm_to_vmem [thread:$0]  (!%p485_p9), %s481_s24, 64, %s489_s26, %s100_s28  }
  0x27   : > { %p579_p1 = scmp.lt.s32.totalorder %s408_s11, 3  ;;  %p580_p5 = scmp.ge.s32.totalorder %s408_s11, 1 }
  0x29   : > { %p117_p13 = pnand %p580_p5, %p579_p1 }
  0x2a   : > { %s122_s19 = sand.u32 (!%p117_p13), 1, %s392_s7  }
  0x2b   : > { %120 = sbr.rel (%p117_p13) target bundleno = 86 (0x56), region = 24  ;;  %s229_s20 = sshll.u32 (!%p117_p13), %s122_s19, 2 }
  0x2c   : > { %s123_s21 = scalar_lea.sflag (!%p117_p13), [#allocation3], %s122_s19  ;;  %s126_s22 = scalar_lea.vmem (!%p117_p13), [#allocation2], %s229_s20 }
  0x32   : > { %379 = dma.done.wait (%p468_p7), %s123_s21, 64  }
  0x33   : > { %381 = vsyncadd (%p468_p7), %s123_s21, 4294967232  ;;  %p230_p10 = scmp.ne.s32.totalorder %s400_s9, 0 }
  0x34   : > { %vm144_vm0 = vcmask (!%p230_p10), 125952   ;;  %v411_v0 = vmov (!%p230_p10), 0.0  }
  0x35   : > { %143 = sbr.rel (%p230_p10) target bundleno = 60 (0x3c), region = 32  ;;  %145 = vst.msk [vmem:[#allocation5] sm:$0xf] (!%p230_p10), %vm144_vm0, %v411_v0 }
  0x3c PF: > { %v146_v1 = vld [vmem:[#allocation5] sm:$0xf]  ;;  %v147_v2 = vld [vmem:[%s126_s22] sm:$0xf]  ;;  %vm150_vm1 = vcmask 125952   ;;  %p530_p9 = scmp.eq.s32.totalorder %s223_s12, 1 }
  0x3d   : > { %v148_v3 = vand.u32 2147483647, %v147_v2  ;;  %s412_s17 = smov [#allocation5]  }
  0x3e   : > { %s161_s24 = sshll.u32 %s412_s17, 4  ;;  %s162_s24 = int_to_ptr.vmem [resolvable:$true] %s161_s24 }
  0x3f   : > { %v149_v4 = vadd.f32 %v148_v3, %v146_v1  ;;  %s328_s9 = scalar_lea.vmem %s162_s24, 64  ;;  %p335_p8 = scmp.lt.s32.totalorder %s162_s24, %s162_s24 }
  0x40   : > { %p329_p7 = scmp.ne.s32.totalorder %s162_s24, %s328_s9  ;;  %p336_p12 = scmp.lt.s32.totalorder %s328_s9, %s328_s9 }
  0x41   : > { %151 = vst.msk [vmem:[#allocation5] sm:$0xf] %vm150_vm1, %v149_v4 }
  0x42   : > { %p330_p11 = pnand %p329_p7, %p530_p9  ;;  %p337_p0 = por %p336_p12, %p335_p8 }
  0x44   : > { %p331_p6 = pneg %p330_p11 }
  0x46   : > { %p338_p2 = pnand %p337_p0, %p331_p6 }
  0x48   : > { %341 = shalt.err (!%p338_p2)
}
  0x49   : > { %s342_s26 = scalar_lea.hbm %s575_s1, 64 }
  0x4a   : > { %p343_p3 = scmp.ne.s32.totalorder %s575_s1, %s342_s26  ;;  %p348_p5 = scmp.lt.u32.totalorder %s342_s26, %s575_s1 }
  0x4c   : > { %p344_p4 = pnand %p343_p3, %p530_p9 }
  0x4e   : > { %p345_p1 = pneg %p344_p4 }
  0x50   : > { %p350_p13 = pnand %p348_p5, %p345_p1 }
  0x52   : > { %353 = shalt.err (!%p350_p13)
}
  0x53   : > { %238 = dma.vmem_to_hbm [thread:$0]  (%p530_p9), %s162_s24, 64, %s575_s1, [#allocation4]  }
  0x54   : > { %383 = dma.done.wait (%p530_p9), [#allocation4], 64  }
  0x55   : > { %385 = vsyncadd (%p530_p9), [#allocation4], 4294967232 }
  0x56 PF: > { %s15_s11 = sadd.s32 1, %s408_s11   ;;  %s582_s6 = smov %s392_s7 }
  0x57   : > { %p12_p10 = scmp.ge.s32.totalorder %s15_s11, 4   ;;  %s583_s7 = smov %s396_s8 }
  0x58   : > { %s584_s8 = smov %s474_s18  ;;  %s585_s9 = smov %s404_s10 }
  0x59   : > { %s586_s10 = smov %s588_s13  ;;  %14 = sbr.rel (!%p12_p10) target bundleno = 5 (0x5), region = 66 }
  0x60   :  { %174 = vsyncpa [#allocation3], 1 }
  0x61   :  { %176 = vsyncpa [#allocation3 + $0x1], 1 }
  0x62   :  { %177 = vsyncpa [#allocation4], 1 }
  0x63   :  { %179 = vsyncpa [#allocation4 + $0x1], 1 }

</bundles_post_ra>
